<compile_context>
chip_gen: v6e
topology: v6e:2x2x1
jax: 0.10.0
libtpu: 0.0.40
codegen_flags: <defaults>
</compile_context>

<pallas_src>
import functools

import jax
import jax.numpy as jnp
from jax.experimental import pallas as pl
from jax.experimental.pallas import tpu as pltpu


def _outconv_kernel(x_ref, w_ref, b_ref, o_ref, *, H, W, apply_act):
    # x_ref : (N*Cin , L)           VMEM, lane axis = flattened spatial
    # w_ref : (9, N*Cout, N*Cin)    VMEM, block-diagonal per-tap weights
    # b_ref : (N*Cout, 1)           VMEM
    # o_ref : (N*Cout, L)           VMEM
    L = H * W
    n_cout = o_ref.shape[0]

    x = x_ref[...].astype(jnp.float32)                      # (N*Cin, L)

    # Boundary masks for the implicit zero padding (halo handled in-kernel).
    pos = jax.lax.broadcasted_iota(jnp.int32, (1, L), 1)    # flat spatial index
    if (W & (W - 1)) == 0:                                   # power of two: no int div
        shift = W.bit_length() - 1
        row = pos >> shift
        col = pos & (W - 1)
    else:                                                    # generic fallback
        row = pos // W
        col = pos - row * W
    row_ok = {-1: row >= 1, 0: None, 1: row <= H - 2}
    col_ok = {-1: col >= 1, 0: None, 1: col <= W - 2}

    acc = jnp.zeros((n_cout, L), jnp.float32)                # single accumulator
    for kh in range(3):
        dh = kh - 1
        for kw in range(3):
            dw = kw - 1
            off = dh * W + dw                                # flat tap offset
            # shifted[:, p] == x[:, p + off]; lane rotation rides the XLU slot.
            sh = x if off == 0 else pltpu.roll(x, shift=(-off) % L, axis=1)
            masks = [m for m in (row_ok[dh], col_ok[dw]) if m is not None]
            if masks:
                m = masks[0] if len(masks) == 1 else masks[0] & masks[1]
                sh = jnp.where(m, sh, 0.0)
            # Channel contraction on the MXU: one dot per tap, whole batch.
            acc = acc + jnp.dot(w_ref[kh * 3 + kw], sh,
                                preferred_element_type=jnp.float32)

    y = acc + b_ref[...]                                     # (N*Cout, L) + (N*Cout, 1)
    if apply_act:
        y = jax.nn.sigmoid(y)
    o_ref[...] = y.astype(o_ref.dtype)                       # single lane-dense store


def out_conv_pallas(x_nchw, weight, bias, act=True):
    """PyTorch OutConv forward: Conv2d(k=3, padding=1) -> Sigmoid (or Identity).

    x_nchw : (N, Cin, H, W)
    weight : (Cout, Cin, 3, 3)   PyTorch conv weight layout
    bias   : (Cout,)
    """
    N, Cin, H, W = x_nchw.shape
    Cout = weight.shape[0]
    L = H * W

    # Free contiguous reshape; no transpose, no pad.
    x_flat = x_nchw.reshape(N * Cin, L)

    # Per-tap block-diagonal weights: w_bd[t] = kron(I_N, weight[:, :, kh, kw]),
    # so one (N*Cout, N*Cin) @ (N*Cin, L) MXU dot contracts the whole batch.
    w_taps = jnp.transpose(weight.astype(jnp.float32), (2, 3, 0, 1)).reshape(9, Cout, Cin)
    eye_n = jnp.eye(N, dtype=jnp.float32)
    w_bd = (eye_n[None, :, None, :, None] *
            w_taps[:, None, :, None, :]).reshape(9, N * Cout, N * Cin)
    b_bd = jnp.tile(bias.astype(jnp.float32), N).reshape(N * Cout, 1)

    kernel = functools.partial(_outconv_kernel, H=H, W=W, apply_act=act)

    # Whole problem is a few tens of KiB -> single invocation, all operands
    # resident in VMEM (no pipelining overhead, no partial-width stores).
    # TODO(synk): for production sizes (W >= 128, large N) switch to a
    # per-channel (H on sublanes, W on lanes) layout with an H-tile / batch
    # "parallel" grid axis and +/-1-row halo so blocks fit v7x's 64 MiB VMEM
    # and both of its TensorCores get work; optionally cast x to bf16 for the
    # MXU dot on mem-bound steps.
    out_flat = pl.pallas_call(
        kernel,
        out_shape=jax.ShapeDtypeStruct((N * Cout, L), x_nchw.dtype),
        in_specs=[
            pl.BlockSpec(memory_space=pltpu.MemorySpace.VMEM),
            pl.BlockSpec(memory_space=pltpu.MemorySpace.VMEM),
            pl.BlockSpec(memory_space=pltpu.MemorySpace.VMEM),
        ],
        out_specs=pl.BlockSpec(memory_space=pltpu.MemorySpace.VMEM),
    )(x_flat, w_bd, b_bd)

    return out_flat.reshape(N, Cout, H, W)


def _reference(x_nchw, weight, bias, act=True):
    y = jax.lax.conv_general_dilated(
        x_nchw, weight, window_strides=(1, 1), padding="SAME",
        dimension_numbers=("NCHW", "OIHW", "NCHW"))
    y = y + bias[None, :, None, None]
    return jax.nn.sigmoid(y) if act else y


if __name__ == "__main__":
    key = jax.random.PRNGKey(0)
    k_x, k_w, k_b = jax.random.split(key, 3)

    N, Cin, Cout, H, W = 2, 4, 3, 16, 16
    x = jax.random.normal(k_x, (N, Cin, H, W), dtype=jnp.float32)

    # Deterministic parameter init (Conv2d(in=4, out=3, k=3), bias=True).
    fan_in = Cin * 3 * 3
    bound = 1.0 / (fan_in ** 0.5)
    weight = jax.random.uniform(k_w, (Cout, Cin, 3, 3),
                                minval=-bound, maxval=bound, dtype=jnp.float32)
    bias = jax.random.uniform(k_b, (Cout,),
                              minval=-bound, maxval=bound, dtype=jnp.float32)

    out = out_conv_pallas(x, weight, bias, act=True)
    out = jax.block_until_ready(out)

    ref = _reference(x, weight, bias, act=True)
    assert out.shape == (N, Cout, H, W)
    assert jnp.allclose(out, ref, atol=1e-5, rtol=1e-5), "mismatch vs reference"

    print("KERNEL_OK")
</pallas_src>

<mosaic_0001>
module attributes {stable_mosaic.version = 11 : i64} {
  func.func @_outconv_kernel(%arg0: memref<8x256xf32, #tpu.memory_space<vmem>>, %arg1: memref<9x6x8xf32, #tpu.memory_space<vmem>>, %arg2: memref<6x1xf32, #tpu.memory_space<vmem>>, %arg3: memref<6x256xf32, #tpu.memory_space<vmem>>) attributes {dimension_semantics = [], scalar_prefetch = 0 : i64, scratch_operands = 0 : i64, tpu.core_type = #tpu.core_type<tc>} {
    %c0 = arith.constant 0 : index
    %c0_0 = arith.constant 0 : index
    %0 = vector.load %arg0[%c0, %c0_0] : memref<8x256xf32, #tpu.memory_space<vmem>>, vector<8x256xf32>
    %1 = tpu.iota {dimensions = array<i32: 1>} : vector<1x256xi32>
    %c4_i32 = arith.constant 4 : i32
    %2 = vector.broadcast %c4_i32 : i32 to vector<1x256xi32>
    %3 = arith.shrsi %1, %2 : vector<1x256xi32>
    %c15_i32 = arith.constant 15 : i32
    %4 = vector.broadcast %c15_i32 : i32 to vector<1x256xi32>
    %5 = arith.andi %1, %4 : vector<1x256xi32>
    %c1_i32 = arith.constant 1 : i32
    %6 = vector.broadcast %c1_i32 : i32 to vector<1x256xi32>
    %7 = arith.cmpi sge, %3, %6 : vector<1x256xi32>
    %c14_i32 = arith.constant 14 : i32
    %8 = vector.broadcast %c14_i32 : i32 to vector<1x256xi32>
    %9 = arith.cmpi sle, %3, %8 : vector<1x256xi32>
    %c1_i32_1 = arith.constant 1 : i32
    %10 = vector.broadcast %c1_i32_1 : i32 to vector<1x256xi32>
    %11 = arith.cmpi sge, %5, %10 : vector<1x256xi32>
    %c14_i32_2 = arith.constant 14 : i32
    %12 = vector.broadcast %c14_i32_2 : i32 to vector<1x256xi32>
    %13 = arith.cmpi sle, %5, %12 : vector<1x256xi32>
    %cst = arith.constant 0.000000e+00 : f32
    %14 = vector.broadcast %cst : f32 to vector<6x256xf32>
    %c17_i32 = arith.constant 17 : i32
    %15 = tpu.dynamic_rotate %0 by %c17_i32 dim 1 : vector<8x256xf32>, i32 -> vector<8x256xf32>
    %16 = arith.andi %7, %11 : vector<1x256xi1>
    %cst_3 = arith.constant 0.000000e+00 : f32
    %17 = vector.shape_cast %16 : vector<1x256xi1> to vector<1x256xi1>
    %18 = vector.broadcast %17 : vector<1x256xi1> to vector<8x256xi1>
    %19 = vector.broadcast %cst_3 : f32 to vector<8x256xf32>
    %20 = arith.select %18, %15, %19 : vector<8x256xi1>, vector<8x256xf32>
    %c0_4 = arith.constant 0 : index
    %c0_5 = arith.constant 0 : index
    %c0_6 = arith.constant 0 : index
    %21 = vector.load %arg1[%c0_4, %c0_5, %c0_6] : memref<9x6x8xf32, #tpu.memory_space<vmem>>, vector<1x6x8xf32>
    %22 = vector.shape_cast %21 : vector<1x6x8xf32> to vector<6x8xf32>
    %cst_7 = arith.constant dense<0.000000e+00> : vector<6x256xf32>
    %23 = tpu.matmul %22, %20, %cst_7 {dimension_numbers = #tpu.dot_dimension_numbers<[1], [0], [0], [1], [0, 0, 1, 1], [], []>} : vector<6x8xf32>, vector<8x256xf32>, vector<6x256xf32> -> vector<6x256xf32>
    %24 = arith.addf %14, %23 : vector<6x256xf32>
    %c16_i32 = arith.constant 16 : i32
    %25 = tpu.dynamic_rotate %0 by %c16_i32 dim 1 : vector<8x256xf32>, i32 -> vector<8x256xf32>
    %cst_8 = arith.constant 0.000000e+00 : f32
    %26 = vector.shape_cast %7 : vector<1x256xi1> to vector<1x256xi1>
    %27 = vector.broadcast %26 : vector<1x256xi1> to vector<8x256xi1>
    %28 = vector.broadcast %cst_8 : f32 to vector<8x256xf32>
    %29 = arith.select %27, %25, %28 : vector<8x256xi1>, vector<8x256xf32>
    %c1 = arith.constant 1 : index
    %c0_9 = arith.constant 0 : index
    %c0_10 = arith.constant 0 : index
    %30 = vector.load %arg1[%c1, %c0_9, %c0_10] : memref<9x6x8xf32, #tpu.memory_space<vmem>>, vector<1x6x8xf32>
    %31 = vector.shape_cast %30 : vector<1x6x8xf32> to vector<6x8xf32>
    %cst_11 = arith.constant dense<0.000000e+00> : vector<6x256xf32>
    %32 = tpu.matmul %31, %29, %cst_11 {dimension_numbers = #tpu.dot_dimension_numbers<[1], [0], [0], [1], [0, 0, 1, 1], [], []>} : vector<6x8xf32>, vector<8x256xf32>, vector<6x256xf32> -> vector<6x256xf32>
    %33 = arith.addf %24, %32 : vector<6x256xf32>
    %c15_i32_12 = arith.constant 15 : i32
    %34 = tpu.dynamic_rotate %0 by %c15_i32_12 dim 1 : vector<8x256xf32>, i32 -> vector<8x256xf32>
    %35 = arith.andi %7, %13 : vector<1x256xi1>
    %cst_13 = arith.constant 0.000000e+00 : f32
    %36 = vector.shape_cast %35 : vector<1x256xi1> to vector<1x256xi1>
    %37 = vector.broadcast %36 : vector<1x256xi1> to vector<8x256xi1>
    %38 = vector.broadcast %cst_13 : f32 to vector<8x256xf32>
    %39 = arith.select %37, %34, %38 : vector<8x256xi1>, vector<8x256xf32>
    %c2 = arith.constant 2 : index
    %c0_14 = arith.constant 0 : index
    %c0_15 = arith.constant 0 : index
    %40 = vector.load %arg1[%c2, %c0_14, %c0_15] : memref<9x6x8xf32, #tpu.memory_space<vmem>>, vector<1x6x8xf32>
    %41 = vector.shape_cast %40 : vector<1x6x8xf32> to vector<6x8xf32>
    %cst_16 = arith.constant dense<0.000000e+00> : vector<6x256xf32>
    %42 = tpu.matmul %41, %39, %cst_16 {dimension_numbers = #tpu.dot_dimension_numbers<[1], [0], [0], [1], [0, 0, 1, 1], [], []>} : vector<6x8xf32>, vector<8x256xf32>, vector<6x256xf32> -> vector<6x256xf32>
    %43 = arith.addf %33, %42 : vector<6x256xf32>
    %c1_i32_17 = arith.constant 1 : i32
    %44 = tpu.dynamic_rotate %0 by %c1_i32_17 dim 1 : vector<8x256xf32>, i32 -> vector<8x256xf32>
    %cst_18 = arith.constant 0.000000e+00 : f32
    %45 = vector.shape_cast %11 : vector<1x256xi1> to vector<1x256xi1>
    %46 = vector.broadcast %45 : vector<1x256xi1> to vector<8x256xi1>
    %47 = vector.broadcast %cst_18 : f32 to vector<8x256xf32>
    %48 = arith.select %46, %44, %47 : vector<8x256xi1>, vector<8x256xf32>
    %c3 = arith.constant 3 : index
    %c0_19 = arith.constant 0 : index
    %c0_20 = arith.constant 0 : index
    %49 = vector.load %arg1[%c3, %c0_19, %c0_20] : memref<9x6x8xf32, #tpu.memory_space<vmem>>, vector<1x6x8xf32>
    %50 = vector.shape_cast %49 : vector<1x6x8xf32> to vector<6x8xf32>
    %cst_21 = arith.constant dense<0.000000e+00> : vector<6x256xf32>
    %51 = tpu.matmul %50, %48, %cst_21 {dimension_numbers = #tpu.dot_dimension_numbers<[1], [0], [0], [1], [0, 0, 1, 1], [], []>} : vector<6x8xf32>, vector<8x256xf32>, vector<6x256xf32> -> vector<6x256xf32>
    %52 = arith.addf %43, %51 : vector<6x256xf32>
    %c4 = arith.constant 4 : index
    %c0_22 = arith.constant 0 : index
    %c0_23 = arith.constant 0 : index
    %53 = vector.load %arg1[%c4, %c0_22, %c0_23] : memref<9x6x8xf32, #tpu.memory_space<vmem>>, vector<1x6x8xf32>
    %54 = vector.shape_cast %53 : vector<1x6x8xf32> to vector<6x8xf32>
    %cst_24 = arith.constant dense<0.000000e+00> : vector<6x256xf32>
    %55 = tpu.matmul %54, %0, %cst_24 {dimension_numbers = #tpu.dot_dimension_numbers<[1], [0], [0], [1], [0, 0, 1, 1], [], []>} : vector<6x8xf32>, vector<8x256xf32>, vector<6x256xf32> -> vector<6x256xf32>
    %56 = arith.addf %52, %55 : vector<6x256xf32>
    %c255_i32 = arith.constant 255 : i32
    %57 = tpu.dynamic_rotate %0 by %c255_i32 dim 1 : vector<8x256xf32>, i32 -> vector<8x256xf32>
    %cst_25 = arith.constant 0.000000e+00 : f32
    %58 = vector.shape_cast %13 : vector<1x256xi1> to vector<1x256xi1>
    %59 = vector.broadcast %58 : vector<1x256xi1> to vector<8x256xi1>
    %60 = vector.broadcast %cst_25 : f32 to vector<8x256xf32>
    %61 = arith.select %59, %57, %60 : vector<8x256xi1>, vector<8x256xf32>
    %c5 = arith.constant 5 : index
    %c0_26 = arith.constant 0 : index
    %c0_27 = arith.constant 0 : index
    %62 = vector.load %arg1[%c5, %c0_26, %c0_27] : memref<9x6x8xf32, #tpu.memory_space<vmem>>, vector<1x6x8xf32>
    %63 = vector.shape_cast %62 : vector<1x6x8xf32> to vector<6x8xf32>
    %cst_28 = arith.constant dense<0.000000e+00> : vector<6x256xf32>
    %64 = tpu.matmul %63, %61, %cst_28 {dimension_numbers = #tpu.dot_dimension_numbers<[1], [0], [0], [1], [0, 0, 1, 1], [], []>} : vector<6x8xf32>, vector<8x256xf32>, vector<6x256xf32> -> vector<6x256xf32>
    %65 = arith.addf %56, %64 : vector<6x256xf32>
    %c241_i32 = arith.constant 241 : i32
    %66 = tpu.dynamic_rotate %0 by %c241_i32 dim 1 : vector<8x256xf32>, i32 -> vector<8x256xf32>
    %67 = arith.andi %9, %11 : vector<1x256xi1>
    %cst_29 = arith.constant 0.000000e+00 : f32
    %68 = vector.shape_cast %67 : vector<1x256xi1> to vector<1x256xi1>
    %69 = vector.broadcast %68 : vector<1x256xi1> to vector<8x256xi1>
    %70 = vector.broadcast %cst_29 : f32 to vector<8x256xf32>
    %71 = arith.select %69, %66, %70 : vector<8x256xi1>, vector<8x256xf32>
    %c6 = arith.constant 6 : index
    %c0_30 = arith.constant 0 : index
    %c0_31 = arith.constant 0 : index
    %72 = vector.load %arg1[%c6, %c0_30, %c0_31] : memref<9x6x8xf32, #tpu.memory_space<vmem>>, vector<1x6x8xf32>
    %73 = vector.shape_cast %72 : vector<1x6x8xf32> to vector<6x8xf32>
    %cst_32 = arith.constant dense<0.000000e+00> : vector<6x256xf32>
    %74 = tpu.matmul %73, %71, %cst_32 {dimension_numbers = #tpu.dot_dimension_numbers<[1], [0], [0], [1], [0, 0, 1, 1], [], []>} : vector<6x8xf32>, vector<8x256xf32>, vector<6x256xf32> -> vector<6x256xf32>
    %75 = arith.addf %65, %74 : vector<6x256xf32>
    %c240_i32 = arith.constant 240 : i32
    %76 = tpu.dynamic_rotate %0 by %c240_i32 dim 1 : vector<8x256xf32>, i32 -> vector<8x256xf32>
    %cst_33 = arith.constant 0.000000e+00 : f32
    %77 = vector.shape_cast %9 : vector<1x256xi1> to vector<1x256xi1>
    %78 = vector.broadcast %77 : vector<1x256xi1> to vector<8x256xi1>
    %79 = vector.broadcast %cst_33 : f32 to vector<8x256xf32>
    %80 = arith.select %78, %76, %79 : vector<8x256xi1>, vector<8x256xf32>
    %c7 = arith.constant 7 : index
    %c0_34 = arith.constant 0 : index
    %c0_35 = arith.constant 0 : index
    %81 = vector.load %arg1[%c7, %c0_34, %c0_35] : memref<9x6x8xf32, #tpu.memory_space<vmem>>, vector<1x6x8xf32>
    %82 = vector.shape_cast %81 : vector<1x6x8xf32> to vector<6x8xf32>
    %cst_36 = arith.constant dense<0.000000e+00> : vector<6x256xf32>
    %83 = tpu.matmul %82, %80, %cst_36 {dimension_numbers = #tpu.dot_dimension_numbers<[1], [0], [0], [1], [0, 0, 1, 1], [], []>} : vector<6x8xf32>, vector<8x256xf32>, vector<6x256xf32> -> vector<6x256xf32>
    %84 = arith.addf %75, %83 : vector<6x256xf32>
    %c239_i32 = arith.constant 239 : i32
    %85 = tpu.dynamic_rotate %0 by %c239_i32 dim 1 : vector<8x256xf32>, i32 -> vector<8x256xf32>
    %86 = arith.andi %9, %13 : vector<1x256xi1>
    %cst_37 = arith.constant 0.000000e+00 : f32
    %87 = vector.shape_cast %86 : vector<1x256xi1> to vector<1x256xi1>
    %88 = vector.broadcast %87 : vector<1x256xi1> to vector<8x256xi1>
    %89 = vector.broadcast %cst_37 : f32 to vector<8x256xf32>
    %90 = arith.select %88, %85, %89 : vector<8x256xi1>, vector<8x256xf32>
    %c8 = arith.constant 8 : index
    %c0_38 = arith.constant 0 : index
    %c0_39 = arith.constant 0 : index
    %91 = vector.load %arg1[%c8, %c0_38, %c0_39] : memref<9x6x8xf32, #tpu.memory_space<vmem>>, vector<1x6x8xf32>
    %92 = vector.shape_cast %91 : vector<1x6x8xf32> to vector<6x8xf32>
    %cst_40 = arith.constant dense<0.000000e+00> : vector<6x256xf32>
    %93 = tpu.matmul %92, %90, %cst_40 {dimension_numbers = #tpu.dot_dimension_numbers<[1], [0], [0], [1], [0, 0, 1, 1], [], []>} : vector<6x8xf32>, vector<8x256xf32>, vector<6x256xf32> -> vector<6x256xf32>
    %94 = arith.addf %84, %93 : vector<6x256xf32>
    %c0_41 = arith.constant 0 : index
    %c0_42 = arith.constant 0 : index
    %95 = vector.load %arg2[%c0_41, %c0_42] : memref<6x1xf32, #tpu.memory_space<vmem>>, vector<6x1xf32>
    %96 = vector.broadcast %95 : vector<6x1xf32> to vector<6x256xf32>
    %97 = arith.addf %94, %96 : vector<6x256xf32>
    %98 = arith.negf %97 : vector<6x256xf32>
    %99 = math.exp %98 : vector<6x256xf32>
    %cst_43 = arith.constant 1.000000e+00 : f32
    %100 = vector.broadcast %cst_43 : f32 to vector<6x256xf32>
    %101 = arith.addf %100, %99 : vector<6x256xf32>
    %102 = arith.divf %100, %101 : vector<6x256xf32>
    %c0_44 = arith.constant 0 : index
    %c0_45 = arith.constant 0 : index
    %103 = vector.load %arg3[%c0_44, %c0_45] : memref<6x256xf32, #tpu.memory_space<vmem>>, vector<6x256xf32>
    tpu.vector_store %arg3[%c0_44, %c0_45], %102 {strides = array<i32>} : memref<6x256xf32, #tpu.memory_space<vmem>>, vector<6x256xf32>,
    return
  }
}

</mosaic_0001>

<bundles_post_ra>
// kernel: tpu_custom_call.1
= control target key start
LH: loop header
LB: loop body
LE: loop exit
PB: predicated region body
PF: predicated region fallthrough
CT: control target
= control target key end

     0   :  { %s955_s14 = smov 17   ;;  %s956_s15 = smov 16   ;;  %v957_v2 = vmov 0.0   ;;  %s1158_s0 = inlined_call_operand.vmem [shape: f32[8,256], index: 0, kind: input, shape index: {}]   ;;  %s1159_s1 = inlined_call_operand.vmem [shape: f32[9,6,8], index: 1, kind: input, shape index: {}]   ;;  %s1160_s2 = inlined_call_operand.vmem [shape: f32[6,1], index: 2, kind: input, shape index: {}]   ;;  %s1161_s3 = inlined_call_operand.hbm [shape: f32[6,256], index: 3, kind: output, shape index: {}]  }
   0x1   :  { %v989_v0 = vld [vmem:[%s1158_s0] sm:$0xff]  ;;  %v996_v1 = vld [vmem:[%s1158_s0 + $0x8] sm:$0xff]  ;;  %131 = vmatprep.mubr.f32.mxu0 %v957_v2  ;;  %205 = vmatprep.mubr.f32.mxu1 %v957_v2 }
   0x2   :  { %32 = vrot.lane.b32.xlu1 %v989_v0, %s955_s14  ;;  %48 = vrot.lane.b32.xlu0 %v989_v0, %s956_s15 }
   0x3   :  { %8 = vsyncpa [#allocation3], 0  ;;  %s958_s18 = smov 15   ;;  %s959_s19 = smov 1   ;;  %v961_v3 = vmov 0   ;;  %v17_v5 = vlaneseq  ;;  %vm63_vm10 = vcmask 64512  }
   0x4   :  { %s960_s0 = smov 127   ;;  %924 = vset.pattern.permute.xlu0 %v961_v3  ;;  %s962_s20 = smov 113   ;;  %v842_v4 = vld [vmem:[%s1160_s2] sm:$0x3f]  ;;  %v878_v26 = vld [vmem:[%s1159_s1 + $0x8] sm:$0x3f] }
   0x5   :  { %s963_s21 = smov 112   ;;  %s964_s22 = smov 111   ;;  %v1017_v6 = vand.u32 127, %v17_v5  ;;  %v47_v27 = vld [vmem:[%s1159_s1] sm:$0x3f] }
   0x6   :  { %34 = vrot.lane.b32.xlu1 %v996_v1, %s955_s14  ;;  %50 = vrot.lane.b32.xlu0 %v996_v1, %s956_s15  ;;  %v885_v32 = vld [vmem:[%s1159_s1 + $0x10] sm:$0x3f]  ;;  %v889_v37 = vld [vmem:[%s1159_s1 + $0x18] sm:$0x3f] }
   0x7   :  { %v19_v7 = vadd.s32 128, %v1017_v6  ;;  %v20_v10 = vshra.s32 %v1017_v6, 4  ;;  %v22_v11 = vand.u32 15, %v1017_v6  ;;  %vm52_vm4 = vcmp.lt.s32.totalorder %v1017_v6, 16  ;;  %v893_v38 = vld [vmem:[%s1159_s1 + $0x20] sm:$0x3f] }
   0x8   :  { %vm36_vm5 = vcmp.lt.s32.totalorder %v1017_v6, 17  ;;  %vm216_vm11 = vcmp.lt.s32.totalorder %v1017_v6, 15  ;;  %vm309_vm14 = vcmp.lt.s32.totalorder %v1017_v6, 1  ;;  %vm478_vm15 = vcmp.lt.s32.totalorder %v1017_v6, 127  ;;  %v895_v45 = vld [vmem:[%s1159_s1 + $0x28] sm:$0x3f] }
   0x9   :  { %v21_v8 = vshra.s32 %v19_v7, 4  ;;  %v23_v9 = vand.u32 15, %v19_v7  ;;  %vm1030_vm2 = vcmp.ge.s32.totalorder %v20_v10, 1  ;;  %vm1034_vm3 = vcmp.ge.s32.totalorder %v22_v11, 1  ;;  %v899_v50 = vld [vmem:[%s1159_s1 + $0x30] sm:$0x3f] }
   0xa   :  { %214 = vrot.lane.b32.xlu1 %v996_v1, %s958_s18  ;;  %212 = vrot.lane.b32.xlu0 %v989_v0, %s958_s18  ;;  %vm1044_vm7 = vcmp.le.s32.totalorder %v22_v11, 14  ;;  %vm39_vm8 = vmand %vm1030_vm2, %vm1034_vm3  ;;  %v903_v55 = vld [vmem:[%s1159_s1 + $0x38] sm:$0x3f]  ;;  %v907_v60 = vld [vmem:[%s1159_s1 + $0x40] sm:$0x3f]  ;;  %s965_s1 = smov [#allocation2]  }
   0xb   :  { %vm1022_vm0 = vcmp.ge.s32.totalorder %v21_v8, 1  ;;  %vm1026_vm1 = vcmp.ge.s32.totalorder %v23_v9, 1  ;;  %vm1052_vm9 = vcmp.le.s32.totalorder %v23_v9, 14  ;;  %vm219_vm13 = vmand %vm1030_vm2, %vm1044_vm7  ;;  %s870_s15 = sshll.u32 %s965_s1, 4  ;;  %s871_s15 = int_to_ptr.vmem [resolvable:$true] %s870_s15 }
   0xc   :  { %vm40_vm6 = vmand %vm1022_vm0, %vm1026_vm1  ;;  %s933_s16 = scalar_lea.vmem %s871_s15, 256  ;;  %p938_p1 = scmp.lt.s32.totalorder %s871_s15, %s871_s15 }
   0xd   :  { %vm220_vm12 = vmand %vm1022_vm0, %vm1052_vm9  ;;  %p934_p0 = scmp.ne.s32.totalorder %s871_s15, %s933_s16  ;;  %p939_p2 = scmp.lt.s32.totalorder %s933_s16, %s933_s16 }
   0xe   :  { %307 = vrot.lane.b32.xlu1 %v996_v1, %s959_s19  ;;  %305 = vrot.lane.b32.xlu0 %v989_v0, %s959_s19 }
   0xf   :  { %p940_p3 = por %p939_p2, %p938_p1 }
  0x11   :  { %p941_p4 = pnand %p940_p3, %p934_p0 }
  0x12   :  { %476 = vrot.lane.b32.xlu1 %v996_v1, %s960_s0  ;;  %474 = vrot.lane.b32.xlu0 %v989_v0, %s960_s0 }
  0x16   :  { %567 = vrot.lane.b32.xlu1 %v996_v1, %s962_s20  ;;  %565 = vrot.lane.b32.xlu0 %v989_v0, %s962_s20 }
  0x1a   :  { %660 = vrot.lane.b32.xlu1 %v996_v1, %s963_s21  ;;  %658 = vrot.lane.b32.xlu0 %v989_v0, %s963_s21 }
  0x1e   :  { %751 = vrot.lane.b32.xlu1 %v996_v1, %s964_s22  ;;  %749 = vrot.lane.b32.xlu0 %v989_v0, %s964_s22 }
  0x22   :  { %845 = vperm.xlu0 %924, %v842_v4  }
  0x74   :  { %v33_v12 = vpop.permute.xlu1 %32  ;;  %v49_v13 = vpop.permute.xlu0 %48 }
  0x78   :  { %v35_v18 = vpop.permute.xlu1 %34  ;;  %v51_v19 = vpop.permute.xlu0 %50 }
  0x79   :  { %v53_v22 = vsel %vm52_vm4, %v49_v13, %v51_v19  ;;  %v37_v23 = vsel %vm36_vm5, %v33_v12, %v35_v18  ;;  %v54_v24 = vsel %vm52_vm4, %v51_v19, %v49_v13  ;;  %v38_v25 = vsel %vm36_vm5, %v35_v18, %v33_v12 }
  0x7a   :  { %879 = vmatprep.subr.msk.mxu0 %vm1022_vm0, %v53_v22  ;;  %882 = vmatprep.subr.msk.mxu1 %vm40_vm6, %v37_v23  ;;  %vm1099_vm0 = vcmp.le.s32.totalorder %v21_v8, 14  ;;  %vm569_vm4 = vcmp.lt.s32.totalorder %v1017_v6, 113 }
  0x7b   :  { %880 = vmatpush1.msk.msra.mxu0 %vm1030_vm2, %v54_v24  ;;  %883 = vmatpush1.msk.msra.mxu1 %vm39_vm8, %v38_v25  ;;  %vm1104_vm2 = vcmp.le.s32.totalorder %v20_v10, 14  ;;  %vm573_vm5 = vmand %vm1099_vm0, %vm1026_vm1 }
  0x7c   :  { %v215_v28 = vpop.permute.xlu1 %214  ;;  %v213_v29 = vpop.permute.xlu0 %212  ;;  %881 = vmatmul.mubr.msk.f32.vlgmr.msra.gmra.mxu0 %vm63_vm10, %v878_v26  ;;  %884 = vmatmul.mubr.msk.f32.vlgmr.msra.gmra.mxu1 %vm63_vm10, %v47_v27  ;;  %vm572_vm6 = vmand %vm1104_vm2, %vm1034_vm3 }
  0x7d   :  { %v217_v30 = vsel %vm216_vm11, %v213_v29, %v215_v28  ;;  %v218_v31 = vsel %vm216_vm11, %v215_v28, %v213_v29  ;;  %296 = vmatprep.mubr.f32.mxu0 %v957_v2  ;;  %387 = vmatprep.mubr.f32.mxu1 %v957_v2  ;;  %vm757_vm8 = vmand %vm1099_vm0, %vm1052_vm9 }
  0x7e   :  { %886 = vmatprep.subr.msk.mxu0 %vm220_vm12, %v217_v30  ;;  %vm756_vm11 = vmand %vm1104_vm2, %vm1044_vm7 }
  0x7f   :  { %887 = vmatpush1.msk.msra.mxu0 %vm219_vm13, %v218_v31 }
  0x80   :  { %v308_v33 = vpop.permute.xlu1 %307  ;;  %v306_v34 = vpop.permute.xlu0 %305  ;;  %888 = vmatmul.mubr.msk.f32.vlgmr.msra.gmra.mxu0 %vm63_vm10, %v885_v32  ;;  %431 = vmatprep.subr.mxu0 %v996_v1 }
  0x81   :  { %v310_v35 = vsel %vm309_vm14, %v306_v34, %v308_v33  ;;  %v311_v36 = vsel %vm309_vm14, %v308_v33, %v306_v34  ;;  %432 = vmatpush1.msra.mxu0 %v989_v0  ;;  %465 = vmatprep.mubr.f32.mxu0 %v957_v2 }
  0x82   :  { %890 = vmatprep.subr.msk.mxu1 %vm1026_vm1, %v310_v35  ;;  %vm662_vm1 = vcmp.lt.s32.totalorder %v1017_v6, 112 }
  0x83   :  { %891 = vmatpush1.msk.msra.mxu1 %vm1034_vm3, %v311_v36  ;;  %vm753_vm3 = vcmp.lt.s32.totalorder %v1017_v6, 111 }
  0x84   :  { %v477_v39 = vpop.permute.xlu1 %476  ;;  %v475_v40 = vpop.permute.xlu0 %474  ;;  %892 = vmatmul.mubr.msk.f32.vlgmr.msra.gmra.mxu1 %vm63_vm10, %v889_v37  ;;  %894 = vmatmul.mubr.msk.f32.vlgmr.msra.gmra.mxu0 %vm63_vm10, %v893_v38 }
  0x85   :  { %v479_v43 = vsel %vm478_vm15, %v475_v40, %v477_v39  ;;  %v480_v44 = vsel %vm478_vm15, %v477_v39, %v475_v40  ;;  %556 = vmatprep.mubr.f32.mxu1 %v957_v2  ;;  %649 = vmatprep.mubr.f32.mxu0 %v957_v2 }
  0x86   :  { %896 = vmatprep.subr.msk.mxu1 %vm1052_vm9, %v480_v44 }
  0x87   :  { %897 = vmatpush1.msk.msra.mxu1 %vm1044_vm7, %v479_v43 }
  0x88   :  { %v568_v46 = vpop.permute.xlu1 %567  ;;  %v566_v47 = vpop.permute.xlu0 %565  ;;  %898 = vmatmul.mubr.msk.f32.vlgmr.msra.gmra.mxu1 %vm63_vm10, %v895_v45 }
  0x89   :  { %v570_v48 = vsel %vm569_vm4, %v566_v47, %v568_v46  ;;  %v571_v49 = vsel %vm569_vm4, %v568_v46, %v566_v47  ;;  %740 = vmatprep.mubr.f32.mxu1 %v957_v2 }
  0x8a   :  { %900 = vmatprep.subr.msk.mxu0 %vm573_vm5, %v571_v49 }
  0x8b   :  { %901 = vmatpush1.msk.msra.mxu0 %vm572_vm6, %v570_v48 }
  0x8c   :  { %v661_v51 = vpop.permute.xlu1 %660  ;;  %v659_v52 = vpop.permute.xlu0 %658  ;;  %902 = vmatmul.mubr.msk.f32.vlgmr.msra.gmra.mxu0 %vm63_vm10, %v899_v50 }
  0x8d   :  { %v663_v53 = vsel %vm662_vm1, %v659_v52, %v661_v51  ;;  %v664_v54 = vsel %vm662_vm1, %v661_v51, %v659_v52  ;;  %833 = vmatprep.mubr.f32.mxu0 %v957_v2 }
  0x8e   :  { %904 = vmatprep.subr.msk.mxu1 %vm1099_vm0, %v664_v54 }
  0x8f   :  { %905 = vmatpush1.msk.msra.mxu1 %vm1104_vm2, %v663_v53 }
  0x90   :  { %v752_v56 = vpop.permute.xlu1 %751  ;;  %v750_v57 = vpop.permute.xlu0 %749  ;;  %906 = vmatmul.mubr.msk.f32.vlgmr.msra.gmra.mxu1 %vm63_vm10, %v903_v55 }
  0x91   :  { %v754_v58 = vsel %vm753_vm3, %v750_v57, %v752_v56  ;;  %v755_v59 = vsel %vm753_vm3, %v752_v56, %v750_v57 }
  0x92   :  { %908 = vmatprep.subr.msk.mxu0 %vm757_vm8, %v755_v59 }
  0x93   :  { %909 = vmatpush1.msk.msra.mxu0 %vm756_vm11, %v754_v58 }
  0x94   :  { %910 = vmatmul.mubr.msk.f32.vlgmr.msra.gmra.mxu0 %vm63_vm10, %v907_v60 }
  0x9d   :  { %v846_v27 = vpop.permute.xlu0 %845 }
 0x13c   :  { %v133_v61 = vpop.f32.mrf.mxu0  ;;  %v207_v62 = vpop.f32.mrf.mxu1 }
 0x13d   :  { %v208_v63 = vadd.f32 %v207_v62, %v133_v61 }
 0x13e   :  { %v135_v0 = vpop.f32.mrf.mxu0  ;;  %v209_v1 = vpop.f32.mrf.mxu1 }
 0x13f   :  { %v210_v2 = vadd.f32 %v209_v1, %v135_v0 }
 0x140   :  { %v298_v3 = vpop.f32.mrf.mxu0 }
 0x141   :  { %v303_v4 = vadd.f32 %v298_v3, %v208_v63 }
 0x142   :  { %v300_v5 = vpop.f32.mrf.mxu0 }
 0x143   :  { %v304_v6 = vadd.f32 %v300_v5, %v210_v2 }
 0x144   :  { %v389_v7 = vpop.f32.mrf.mxu1  ;;  %v467_v8 = vpop.f32.mrf.mxu0 }
 0x145   :  { %v394_v9 = vadd.f32 %v389_v7, %v303_v4 }
 0x146   :  { %v391_v10 = vpop.f32.mrf.mxu1  ;;  %v469_v13 = vpop.f32.mrf.mxu0 }
 0x147   :  { %v395_v11 = vadd.f32 %v391_v10, %v304_v6  ;;  %v472_v12 = vadd.f32 %v467_v8, %v394_v9 }
 0x148   :  { %v558_v14 = vpop.f32.mrf.mxu1 }
 0x149   :  { %v473_v15 = vadd.f32 %v469_v13, %v395_v11  ;;  %v563_v16 = vadd.f32 %v558_v14, %v472_v12 }
 0x14a   :  { %v560_v17 = vpop.f32.mrf.mxu1 }
 0x14b   :  { %v564_v19 = vadd.f32 %v560_v17, %v473_v15 }
 0x14c   :  { %v651_v18 = vpop.f32.mrf.mxu0 }
 0x14d   :  { %v656_v20 = vadd.f32 %v651_v18, %v563_v16 }
 0x14e   :  { %v653_v21 = vpop.f32.mrf.mxu0 }
 0x14f   :  { %v657_v24 = vadd.f32 %v653_v21, %v564_v19 }
 0x150   :  { %v742_v22 = vpop.f32.mrf.mxu1 }
 0x151   :  { %v747_v25 = vadd.f32 %v742_v22, %v656_v20 }
 0x152   :  { %v744_v23 = vpop.f32.mrf.mxu1 }
 0x153   :  { %v748_v28 = vadd.f32 %v744_v23, %v657_v24 }
 0x154   :  { %v835_v26 = vpop.f32.mrf.mxu0 }
 0x155   :  { %v840_v29 = vadd.f32 %v835_v26, %v747_v25 }
 0x156   :  { %v837_v30 = vpop.f32.mrf.mxu0 }
 0x157   :  { %v841_v31 = vadd.f32 %v837_v30, %v748_v28  ;;  %v848_v32 = vadd.f32 %v846_v27, %v840_v29 }
 0x159   :  { %v849_v33 = vadd.f32 %v846_v27, %v841_v31  ;;  %v911_v34 = vmul.f32 -1.442695, %v848_v32 }
 0x15b   :  { %925 = vpow2.f32 %v911_v34  ;;  %v912_v35 = vmul.f32 -1.442695, %v849_v33 }
 0x15d   :  { %927 = vpow2.f32 %v912_v35 }
 0x168   :  { %v926_v36 = vpop.eup %925 }
 0x169   :  { %v856_v37 = vadd.f32 1.0, %v926_v36 }
 0x16a   :  { %v928_v38 = vpop.eup %927 }
 0x16b   :  { %v857_v39 = vadd.f32 1.0, %v928_v38  ;;  %929 = vrcp.f32 %v856_v37 }
 0x16d   :  { %931 = vrcp.f32 %v857_v39 }
 0x178   :  { %v930_v40 = vpop.eup %929 }
 0x179   :  { %862 = vst [vmem:[#allocation2] sm:$0x3f] %v930_v40 }
 0x17a   :  { %v932_v41 = vpop.eup %931 }
 0x17b   :  { %863 = vst [vmem:[#allocation2 + $0x8] sm:$0x3f] %v932_v41 }
 0x17c   :  { %944 = shalt.err (!%p941_p4)
}
 0x17d   :  { %873 = dma.vmem_to_hbm [thread:$0]  %s871_s15, 256, %s1161_s3, [#allocation3]  }
 0x17e   :  { %953 = dma.done.wait [#allocation3], 256  }
 0x17f   :  { %954 = vsyncadd [#allocation3], 4294967040 }
 0x180   :  { %877 = vsyncpa [#allocation3], 1 }

</bundles_post_ra>
